<compile_context>
chip_gen: v6e
topology: v6e:2x2x1
jax: 0.10.0
libtpu: 0.0.40
codegen_flags: <defaults>
</compile_context>

<pallas_src>
import functools

import jax
import jax.numpy as jnp
from jax.experimental import pallas as pl
from jax.experimental.pallas import tpu as pltpu


def _zero_shot_kernel(hb_ref, w_ref, hf_ref, wl_ref, c_ref, out_ref,
                      m_sc, s_sc, *, valid_v, tv, needs_mask):
    """One vocab-tile grid step (grid is 1-D over the vocab axis).

    hb_ref : [M, D]  bf16  hidden rows, pre-cast (resident, single-buffered)
    w_ref  : [D, TV] bf16  lm_head tile, streamed over the vocab axis
    hf_ref : [M, D]  f32   hidden rows for the final W@M matmul (resident)
    wl_ref : [D, Lp] f32   lm_head @ label multi-hot matrix (folded gather)
    c_ref  : [1, Lp] f32   tokens-per-label counts
    out_ref: [M, Lp] f32   accumulator-pattern output, written at k == last
    m_sc, s_sc : [M, 1] f32 running max / sum-of-exp for the logsumexp
    """
    k = pl.program_id(0)

    @pl.when(k == 0)
    def _():
        m_sc[...] = jnp.full_like(m_sc, -jnp.inf)
        s_sc[...] = jnp.zeros_like(s_sc)

    # bf16 MXU matmul with f32 accumulation; max/exp/log stay in f32
    # (v5e has no bf16 VPU/EUP).
    logits = jnp.dot(hb_ref[...], w_ref[...],
                     preferred_element_type=jnp.float32)            # [M, TV]

    if needs_mask:
        # Mask padded / tail vocab columns so they never enter the logsumexp.
        col = k * tv + jax.lax.broadcasted_iota(jnp.int32, logits.shape, 1)
        logits = jnp.where(col < valid_v, logits, -jnp.inf)

    m_new = jnp.maximum(m_sc[...], jnp.max(logits, axis=-1, keepdims=True))
    s_sc[...] = (s_sc[...] * jnp.exp(m_sc[...] - m_new)
                 + jnp.sum(jnp.exp(logits - m_new), axis=-1, keepdims=True))
    m_sc[...] = m_new

    @pl.when(k == pl.num_programs(0) - 1)
    def _():
        # out[b, i] = (h @ W @ M)[b, i] - counts[i] * logsumexp(h @ W)[b]
        lse = m_sc[...] + jnp.log(s_sc[...])                         # [M, 1]
        label_logits = jnp.dot(hf_ref[...], wl_ref[...],
                               preferred_element_type=jnp.float32)   # [M, Lp]
        out_ref[...] = label_logits - c_ref[...] * lse


def zero_shot_classify(input_ids, embedding, lm_head, label_matrix, num_labels,
                       *, vocab_tile=None, vmem_limit_bytes=None):
    """input_ids: [B, S] int32.  Returns [B, num_labels] float32."""
    B, S = input_ids.shape
    D = embedding.shape[1]
    V = lm_head.shape[1]
    Lp = label_matrix.shape[1]

    # Only position 0 contributes to the output -> compute only its hidden row.
    # TODO(synk): the pretrained Llama transformer body (attention/MLP stack)
    # is replaced by a deterministic embedding-lookup + tanh stub.
    hidden = jnp.tanh(embedding[input_ids[:, 0]]).astype(jnp.float32)   # [B, D]

    # Pad rows to a sublane multiple; padded rows are zeros and discarded.
    m_pad = max(8, pl.cdiv(B, 8) * 8)
    hidden = jnp.pad(hidden, ((0, m_pad - B), (0, 0)))
    hidden_bf16 = hidden.astype(jnp.bfloat16)   # hoisted cast (done once, not per step)

    # bf16 weight for the streamed vocab matmul (dominant HBM traffic).
    # Fold the per-label gather/sum into the head, consistent with the
    # bf16-rounded weights used for the logsumexp.
    w_bf16 = lm_head.astype(jnp.bfloat16)
    w_label = jnp.dot(w_bf16.astype(jnp.float32), label_matrix,
                      preferred_element_type=jnp.float32)               # [D, Lp]
    counts = jnp.sum(label_matrix, axis=0, keepdims=True)               # [1, Lp]

    # ---- Per-generation VMEM budget and vocab-tile sizing ---------------
    try:
        vmem_cap = int(pltpu.get_tpu_info().vmem_capacity_bytes)
    except Exception:
        vmem_cap = 64 << 20
    if vmem_limit_bytes is None:
        # Leave ~16 MiB headroom: ~112 MiB on v5e/v6e (128 MiB), ~48 MiB on v7x (64 MiB).
        vmem_limit_bytes = max(32 << 20, vmem_cap - (16 << 20))

    # Resident (single-buffered) VMEM: hidden f32 + bf16, W@M, counts, out, scratch.
    resident = (m_pad * D * 4 + m_pad * D * 2 + D * Lp * 4 + Lp * 4
                + m_pad * Lp * 4 + 2 * m_pad * 4)
    v128 = pl.cdiv(V, 128) * 128
    if vocab_tile is None:
        avail = int(0.85 * vmem_limit_bytes) - resident
        tv = (avail // (2 * 2 * D)) // 128 * 128    # 2 buffers x bf16 x D rows
        tv = max(128, min(tv, 4096))
    else:
        tv = max(128, (vocab_tile // 128) * 128)
    tv = min(tv, v128)

    n_k = pl.cdiv(V, tv)
    v_pad = n_k * tv
    needs_mask = (v_pad != V)
    if v_pad != V:
        w_bf16 = jnp.pad(w_bf16, ((0, 0), (0, v_pad - V)))

    kernel = functools.partial(_zero_shot_kernel,
                               valid_v=V, tv=tv, needs_mask=needs_mask)

    cost = pl.CostEstimate(
        flops=int(2 * m_pad * D * v_pad + 2 * m_pad * D * Lp),
        transcendentals=int(m_pad * v_pad),
        bytes_accessed=int(D * v_pad * 2 + m_pad * D * 6 + D * Lp * 4
                           + m_pad * Lp * 4 + Lp * 4),
    )

    out = pl.pallas_call(
        kernel,
        out_shape=jax.ShapeDtypeStruct((m_pad, Lp), jnp.float32),
        grid_spec=pltpu.PrefetchScalarGridSpec(
            num_scalar_prefetch=0,
            grid=(n_k,),                                       # 1-D: vocab only
            in_specs=[
                pl.BlockSpec((m_pad, D), lambda k: (0, 0),     # hidden bf16 (resident)
                             pipeline_mode=pl.Buffered(1)),
                pl.BlockSpec((D, tv), lambda k: (0, k)),       # lm_head (streamed, 2-buf)
                pl.BlockSpec((m_pad, D), lambda k: (0, 0),     # hidden f32 (resident)
                             pipeline_mode=pl.Buffered(1)),
                pl.BlockSpec((D, Lp), lambda k: (0, 0),        # W @ M (resident)
                             pipeline_mode=pl.Buffered(1)),
                pl.BlockSpec((1, Lp), lambda k: (0, 0),        # counts (resident)
                             pipeline_mode=pl.Buffered(1)),
            ],
            out_specs=pl.BlockSpec((m_pad, Lp), lambda k: (0, 0)),
            scratch_shapes=[pltpu.VMEM((m_pad, 1), jnp.float32),
                            pltpu.VMEM((m_pad, 1), jnp.float32)],
        ),
        compiler_params=pltpu.CompilerParams(
            dimension_semantics=("arbitrary",),
            vmem_limit_bytes=int(vmem_limit_bytes),
        ),
        cost_estimate=cost,
    )(hidden_bf16, w_bf16, hidden, w_label, counts)

    return out[:B, :num_labels]


def reference(input_ids, embedding, lm_head, label_token_ids):
    """Pure-JAX (full f32) reference mirroring the PyTorch forward."""
    B, S = input_ids.shape
    hidden = jnp.tanh(embedding[input_ids.reshape(-1)])
    logits = (hidden @ lm_head).reshape(B, S, -1)
    log_probs = jax.nn.log_softmax(logits, axis=-1)
    cols = []
    for ids in label_token_ids:
        total = jnp.sum(log_probs[:, :, jnp.array(ids)], axis=-1)   # [B, S]
        cols.append(total[:, 0])
    return jnp.stack(cols, axis=-1)                                  # [B, num_labels]


if __name__ == "__main__":
    # Small shapes consistent with the module's forward.  V is deliberately
    # NOT a multiple of the tile so the tail-masking path is exercised.
    B, S, D, V = 2, 8, 32, 250
    num_labels = 2
    L_pad = 128  # label axis padded to a full lane width

    key = jax.random.PRNGKey(0)
    k_emb, k_head, k_ids = jax.random.split(key, 3)

    embedding = jax.random.normal(k_emb, (V, D), dtype=jnp.float32) * 0.02
    lm_head = jax.random.normal(k_head, (D, V), dtype=jnp.float32) * 0.02
    input_ids = jax.random.randint(k_ids, (B, S), 0, V, dtype=jnp.int32)

    # tokenizer.encode(label) stand-ins: fixed token-id lists per label.
    label_token_ids = [[3, 7], [11, 19, 23]]
    assert len(label_token_ids) == num_labels

    # Multi-hot (count) matrix M[v, i] = #times token v appears in label i.
    label_matrix = jnp.zeros((V, L_pad), dtype=jnp.float32)
    for i, ids in enumerate(label_token_ids):
        for t in ids:
            label_matrix = label_matrix.at[t, i].add(1.0)

    # vocab_tile=128 here only to exercise the multi-step streaming logsumexp
    # at toy V; at real Llama shapes leave vocab_tile=None (auto, 2K-4K wide).
    out = zero_shot_classify(input_ids, embedding, lm_head, label_matrix,
                             num_labels, vocab_tile=128)
    out = jax.block_until_ready(out)

    ref = reference(input_ids, embedding, lm_head, label_token_ids)
    assert out.shape == (B, num_labels)
    assert jnp.allclose(out, ref, atol=2e-3, rtol=2e-3), (out, ref)

    print("KERNEL_OK")
</pallas_src>

<mosaic_0001>
module attributes {stable_mosaic.version = 11 : i64} {
  func.func @_zero_shot_kernel(%arg0: i32, %arg1: memref<8x32xbf16, #tpu.memory_space<vmem>>, %arg2: memref<32x128xbf16, #tpu.memory_space<vmem>>, %arg3: memref<8x32xf32, #tpu.memory_space<vmem>>, %arg4: memref<32x128xf32, #tpu.memory_space<vmem>>, %arg5: memref<1x128xf32, #tpu.memory_space<vmem>>, %arg6: memref<8x128xf32, #tpu.memory_space<vmem>>, %arg7: memref<8x1xf32, #tpu.memory_space<vmem>>, %arg8: memref<8x1xf32, #tpu.memory_space<vmem>>) attributes {dimension_semantics = [#tpu.dimension_semantics<arbitrary>], iteration_bounds = array<i64: 2>, scalar_prefetch = 0 : i64, scratch_operands = 2 : i64, tpu.core_type = #tpu.core_type<tc>, window_params = [{pipeline_mode = #tpu.pipeline_mode<synchronous>, transform_indices = @transform_0, window_bounds = array<i64: 8, 32>}, {transform_indices = @transform_1, window_bounds = array<i64: 32, 128>}, {pipeline_mode = #tpu.pipeline_mode<synchronous>, transform_indices = @transform_2, window_bounds = array<i64: 8, 32>}, {pipeline_mode = #tpu.pipeline_mode<synchronous>, transform_indices = @transform_3, window_bounds = array<i64: 32, 128>}, {pipeline_mode = #tpu.pipeline_mode<synchronous>, transform_indices = @transform_4, window_bounds = array<i64: 1, 128>}, {pipeline_mode = #tpu.pipeline_mode<synchronous>, transform_indices = @transform_5, window_bounds = array<i64: 8, 128>}]} {
    %c0_i32 = arith.constant 0 : i32
    %0 = arith.cmpi eq, %arg0, %c0_i32 : i32
    %1 = arith.extui %0 : i1 to i32
    %c0_i32_0 = arith.constant 0 : i32
    %2 = arith.cmpi ne, %1, %c0_i32_0 : i32
    scf.if %2 {
      %cst_18 = arith.constant 0xFF800000 : f32
      %34 = vector.broadcast %cst_18 : f32 to vector<8x1xf32>
      %c0_19 = arith.constant 0 : index
      %c0_20 = arith.constant 0 : index
      %35 = vector.load %arg7[%c0_19, %c0_20] : memref<8x1xf32, #tpu.memory_space<vmem>>, vector<8x1xf32>
      tpu.vector_store %arg7[%c0_19, %c0_20], %34 {strides = array<i32>} : memref<8x1xf32, #tpu.memory_space<vmem>>, vector<8x1xf32>,
      %cst_21 = arith.constant 0.000000e+00 : f32
      %36 = vector.broadcast %cst_21 : f32 to vector<8x1xf32>
      %c0_22 = arith.constant 0 : index
      %c0_23 = arith.constant 0 : index
      %37 = vector.load %arg8[%c0_22, %c0_23] : memref<8x1xf32, #tpu.memory_space<vmem>>, vector<8x1xf32>
      tpu.vector_store %arg8[%c0_22, %c0_23], %36 {strides = array<i32>} : memref<8x1xf32, #tpu.memory_space<vmem>>, vector<8x1xf32>,
    } else {
    }
    %c0 = arith.constant 0 : index
    %c0_1 = arith.constant 0 : index
    %3 = vector.load %arg1[%c0, %c0_1] : memref<8x32xbf16, #tpu.memory_space<vmem>>, vector<8x32xbf16>
    %c0_2 = arith.constant 0 : index
    %c0_3 = arith.constant 0 : index
    %4 = vector.load %arg2[%c0_2, %c0_3] : memref<32x128xbf16, #tpu.memory_space<vmem>>, vector<32x128xbf16>
    %cst = arith.constant dense<0.000000e+00> : vector<8x128xf32>
    %5 = tpu.matmul %3, %4, %cst {dimension_numbers = #tpu.dot_dimension_numbers<[1], [0], [0], [1], [0, 0, 1, 1], [], []>} : vector<8x32xbf16>, vector<32x128xbf16>, vector<8x128xf32> -> vector<8x128xf32>
    %c128_i32 = arith.constant 128 : i32
    %6 = arith.muli %arg0, %c128_i32 : i32
    %7 = tpu.iota {dimensions = array<i32: 1>} : vector<8x128xi32>
    %8 = vector.broadcast %6 : i32 to vector<8x128xi32>
    %9 = arith.addi %8, %7 : vector<8x128xi32>
    %c250_i32 = arith.constant 250 : i32
    %10 = vector.broadcast %c250_i32 : i32 to vector<8x128xi32>
    %11 = arith.cmpi slt, %9, %10 : vector<8x128xi32>
    %cst_4 = arith.constant 0xFF800000 : f32
    %12 = vector.broadcast %cst_4 : f32 to vector<8x128xf32>
    %13 = arith.select %11, %5, %12 : vector<8x128xi1>, vector<8x128xf32>
    %c0_5 = arith.constant 0 : index
    %c0_6 = arith.constant 0 : index
    %14 = vector.load %arg7[%c0_5, %c0_6] : memref<8x1xf32, #tpu.memory_space<vmem>>, vector<8x1xf32>
    %cst_7 = arith.constant dense<0xFF800000> : vector<8xf32>
    %15 = vector.multi_reduction <maximumf>, %13, %cst_7 [1] : vector<8x128xf32> to vector<8xf32>
    %16 = vector.shape_cast %15 : vector<8xf32> to vector<8x1xf32>
    %17 = arith.maximumf %14, %16 : vector<8x1xf32>
    %c0_8 = arith.constant 0 : index
    %c0_9 = arith.constant 0 : index
    %18 = vector.load %arg8[%c0_8, %c0_9] : memref<8x1xf32, #tpu.memory_space<vmem>>, vector<8x1xf32>
    %c0_10 = arith.constant 0 : index
    %c0_11 = arith.constant 0 : index
    %19 = vector.load %arg7[%c0_10, %c0_11] : memref<8x1xf32, #tpu.memory_space<vmem>>, vector<8x1xf32>
    %20 = arith.subf %19, %17 : vector<8x1xf32>
    %21 = math.exp %20 : vector<8x1xf32>
    %22 = arith.mulf %18, %21 : vector<8x1xf32>
    %23 = vector.broadcast %17 : vector<8x1xf32> to vector<8x128xf32>
    %24 = arith.subf %13, %23 : vector<8x128xf32>
    %25 = math.exp %24 : vector<8x128xf32>
    %cst_12 = arith.constant dense<0.000000e+00> : vector<8xf32>
    %26 = vector.multi_reduction <add>, %25, %cst_12 [1] : vector<8x128xf32> to vector<8xf32>
    %27 = vector.shape_cast %26 : vector<8xf32> to vector<8x1xf32>
    %28 = arith.addf %22, %27 : vector<8x1xf32>
    %c0_13 = arith.constant 0 : index
    %c0_14 = arith.constant 0 : index
    %29 = vector.load %arg8[%c0_13, %c0_14] : memref<8x1xf32, #tpu.memory_space<vmem>>, vector<8x1xf32>
    tpu.vector_store %arg8[%c0_13, %c0_14], %28 {strides = array<i32>} : memref<8x1xf32, #tpu.memory_space<vmem>>, vector<8x1xf32>,
    %c0_15 = arith.constant 0 : index
    %c0_16 = arith.constant 0 : index
    %30 = vector.load %arg7[%c0_15, %c0_16] : memref<8x1xf32, #tpu.memory_space<vmem>>, vector<8x1xf32>
    tpu.vector_store %arg7[%c0_15, %c0_16], %17 {strides = array<i32>} : memref<8x1xf32, #tpu.memory_space<vmem>>, vector<8x1xf32>,
    %c1_i32 = arith.constant 1 : i32
    %31 = arith.cmpi eq, %arg0, %c1_i32 : i32
    %32 = arith.extui %31 : i1 to i32
    %c0_i32_17 = arith.constant 0 : i32
    %33 = arith.cmpi ne, %32, %c0_i32_17 : i32
    scf.if %33 {
      %c0_18 = arith.constant 0 : index
      %c0_19 = arith.constant 0 : index
      %34 = vector.load %arg7[%c0_18, %c0_19] : memref<8x1xf32, #tpu.memory_space<vmem>>, vector<8x1xf32>
      %c0_20 = arith.constant 0 : index
      %c0_21 = arith.constant 0 : index
      %35 = vector.load %arg8[%c0_20, %c0_21] : memref<8x1xf32, #tpu.memory_space<vmem>>, vector<8x1xf32>
      %36 = math.log %35 : vector<8x1xf32>
      %37 = arith.addf %34, %36 : vector<8x1xf32>
      %c0_22 = arith.constant 0 : index
      %c0_23 = arith.constant 0 : index
      %38 = vector.load %arg3[%c0_22, %c0_23] : memref<8x32xf32, #tpu.memory_space<vmem>>, vector<8x32xf32>
      %c0_24 = arith.constant 0 : index
      %c0_25 = arith.constant 0 : index
      %39 = vector.load %arg4[%c0_24, %c0_25] : memref<32x128xf32, #tpu.memory_space<vmem>>, vector<32x128xf32>
      %cst_26 = arith.constant dense<0.000000e+00> : vector<8x128xf32>
      %40 = tpu.matmul %38, %39, %cst_26 {dimension_numbers = #tpu.dot_dimension_numbers<[1], [0], [0], [1], [0, 0, 1, 1], [], []>} : vector<8x32xf32>, vector<32x128xf32>, vector<8x128xf32> -> vector<8x128xf32>
      %c0_27 = arith.constant 0 : index
      %c0_28 = arith.constant 0 : index
      %41 = vector.load %arg5[%c0_27, %c0_28] : memref<1x128xf32, #tpu.memory_space<vmem>>, vector<1x128xf32>
      %42 = vector.broadcast %41 : vector<1x128xf32> to vector<8x128xf32>
      %43 = vector.broadcast %37 : vector<8x1xf32> to vector<8x128xf32>
      %44 = arith.mulf %42, %43 : vector<8x128xf32>
      %45 = arith.subf %40, %44 : vector<8x128xf32>
      %c0_29 = arith.constant 0 : index
      %c0_30 = arith.constant 0 : index
      %46 = vector.load %arg6[%c0_29, %c0_30] : memref<8x128xf32, #tpu.memory_space<vmem>>, vector<8x128xf32>
      tpu.vector_store %arg6[%c0_29, %c0_30], %45 {strides = array<i32>} : memref<8x128xf32, #tpu.memory_space<vmem>>, vector<8x128xf32>,
    } else {
    }
    return
  }
  func.func @transform_0(%arg0: i32) -> (i32, i32) {
    %c0_i32 = arith.constant 0 : i32
    %c0_i32_0 = arith.constant 0 : i32
    %c0_i32_1 = arith.constant 0 : i32
    return %c0_i32, %c0_i32_0 : i32, i32
  }
  func.func @transform_1(%arg0: i32) -> (i32, i32) {
    %c0_i32 = arith.constant 0 : i32
    %c0_i32_0 = arith.constant 0 : i32
    return %c0_i32, %arg0 : i32, i32
  }
  func.func @transform_2(%arg0: i32) -> (i32, i32) {
    %c0_i32 = arith.constant 0 : i32
    %c0_i32_0 = arith.constant 0 : i32
    %c0_i32_1 = arith.constant 0 : i32
    return %c0_i32, %c0_i32_0 : i32, i32
  }
  func.func @transform_3(%arg0: i32) -> (i32, i32) {
    %c0_i32 = arith.constant 0 : i32
    %c0_i32_0 = arith.constant 0 : i32
    %c0_i32_1 = arith.constant 0 : i32
    return %c0_i32, %c0_i32_0 : i32, i32
  }
  func.func @transform_4(%arg0: i32) -> (i32, i32) {
    %c0_i32 = arith.constant 0 : i32
    %c0_i32_0 = arith.constant 0 : i32
    %c0_i32_1 = arith.constant 0 : i32
    return %c0_i32, %c0_i32_0 : i32, i32
  }
  func.func @transform_5(%arg0: i32) -> (i32, i32) {
    %c0_i32 = arith.constant 0 : i32
    %c0_i32_0 = arith.constant 0 : i32
    %c0_i32_1 = arith.constant 0 : i32
    return %c0_i32, %c0_i32_0 : i32, i32
  }
}

</mosaic_0001>

<bundles_post_ra>
// kernel: tpu_custom_call.1
= control target key start
LH: loop header
LB: loop body
LE: loop exit
PB: predicated region body
PF: predicated region fallthrough
CT: control target
= control target key end

     0   :  { %10 = vsyncpa [#allocation5], 0  ;;  %s1122_s0 = inlined_call_operand.hbm [shape: bf16[8,32], index: 0, kind: input, shape index: {}]   ;;  %s1123_s1 = inlined_call_operand.hbm [shape: bf16[32,256], index: 1, kind: input, shape index: {}]   ;;  %s1124_s2 = inlined_call_operand.hbm [shape: f32[8,32], index: 2, kind: input, shape index: {}]   ;;  %s1125_s3 = inlined_call_operand.hbm [shape: f32[32,128], index: 3, kind: input, shape index: {}]   ;;  %s1126_s4 = inlined_call_operand.vmem [shape: f32[1,128], index: 4, kind: input, shape index: {}]   ;;  %s1127_s5 = inlined_call_operand.hbm [shape: f32[8,128], index: 5, kind: output, shape index: {}]  }
   0x1   :  { %11 = vsyncpa [#allocation8], 0 }
   0x2   :  { %13 = vsyncpa [#allocation8 + $0x1], 0 }
   0x3   :  { %14 = vsyncpa [#allocation11], 0 }
   0x4   :  { %15 = vsyncpa [#allocation6], 0  ;;  %s939_s18 = smov 0   ;;  %s941_s19 = smov 0  }
   0x5   :  { %s943_s20 = smov 0   ;;  %s945_s21 = smov 0  }
   0x6 LB: > { %s958_s22 = sadd.s32 4294967295, %s890_s21   ;;  %s961_s23 = sadd.s32 1, %s890_s21   ;;  %s890_s21 = sphi %s945_s21, %s1148_s21   ;;  %s886_s20 = sphi %s943_s20, %s1147_s20   ;;  %s882_s19 = sphi %s941_s19, %s1146_s19   ;;  %s878_s18 = sphi %s939_s18, %s1145_s18  }
   0x7   : > { %s46_s24 = ssub.s32 %s890_s21, %s961_s23  ;;  %s49_s25 = sadd.s32 1, %s886_s20 }
   0x8   : > { %p47_p0 = scmp.eq.s32.totalorder %s46_s24, 0  ;;  %p56_p1 = scmp.ne.s32.totalorder %s886_s20, %s882_s19 }
   0x9   : > { %p57_p2 = scmp.eq.s32.totalorder %s890_s21, 0  ;;  %p62_p3 = scmp.ne.s32.totalorder %s882_s19, %s878_s18 }
   0xa   : > { %s971_s26 = scalar_select %p47_p0, %s886_s20, %s49_s25  }
   0xb   : > { %p973_p4 = por %p57_p2, %p56_p1  ;;  %p1128_p5 = scmp.eq.s32.totalorder %s958_s22, 0 }
   0xc   : > { %p560_p6 = scmp.ge.s32.totalorder %s890_s21, 1  ;;  %p157_p7 = scmp.lt.s32.totalorder %s890_s21, 3 }
   0xd   : > { %p982_p8 = por %p1128_p5, %p62_p3  ;;  %s892_s30 = smov [#allocation9]  }
   0xe   : > { %p987_p10 = pnand %p560_p6, %p157_p7  ;;  %s181_s6 = sshll.u32 %s892_s30, 4  ;;  %s182_s6 = int_to_ptr.vmem [resolvable:$true] %s181_s6 }
   0xf   : > { %s1132_s28 = scalar_select %p982_p8, 1, 0 }
  0x10   : > { %s1133_s29 = scalar_select %p987_p10, 1, 0 }
  0x11   : > { %p629_p11 = pneg %p987_p10  ;;  %p646_p12 = scmp.lt.s32.totalorder %s890_s21, 2 }
  0x12   : > { %s893_s8 = smov [#allocation4]   ;;  %s721_s11 = scalar_lea.vmem %s182_s6, 128 }
  0x13   : > { %p996_p13 = pnand %p629_p11, %p1128_p5  ;;  %s170_s9 = sshll.u32 %s893_s8, 4  ;;  %s171_s9 = int_to_ptr.vmem [resolvable:$true] %s170_s9 }
  0x14   : > { %p1002_p0 = pnand %p646_p12, %p973_p4  ;;  %p722_p2 = scmp.ne.s32.totalorder %s182_s6, %s721_s11 }
  0x15   : > { %p712_p1 = pneg %p996_p13  ;;  %p729_p7 = scmp.lt.s32.totalorder %s182_s6, %s182_s6 }
  0x16   : > { %p730_p11 = scmp.lt.s32.totalorder %s721_s11, %s721_s11 }
  0x17   : > { %p724_p3 = pnand %p722_p2, %p712_p1 }
  0x18   : > { %p731_p9 = por %p730_p11, %p729_p7 }
  0x19   : > { %p725_p6 = pneg %p724_p3 }
  0x1b   : > { %p732_p5 = pnand %p731_p9, %p725_p6 }
  0x1d   : > { %735 = shalt.err (!%p732_p5)
}
  0x1e   : > { %635 = dma.hbm_to_vmem [thread:$0]  (!%p996_p13), %s1124_s2, 128, %s182_s6, [#allocation8]  }
  0x1f   : > { %s894_s14 = smov [#allocation10]   ;;  %s747_s16 = scalar_lea.vmem %s171_s9, 64 }
  0x20   : > { %s191_s15 = sshll.u32 %s894_s14, 4  ;;  %p748_p4 = scmp.ne.s32.totalorder %s171_s9, %s747_s16  ;;  %s192_s15 = int_to_ptr.vmem [resolvable:$true] %s191_s15 }
  0x21   : > { %p755_p3 = scmp.lt.s32.totalorder %s171_s9, %s171_s9  ;;  %p756_p8 = scmp.lt.s32.totalorder %s747_s16, %s747_s16 }
  0x22   : > { %p750_p12 = pnand %p748_p4, %p712_p1 }
  0x23   : > { %p757_p7 = por %p756_p8, %p755_p3 }
  0x24   : > { %p751_p2 = pneg %p750_p12 }
  0x26   : > { %p758_p9 = pnand %p757_p7, %p751_p2 }
  0x28   : > { %761 = shalt.err (!%p758_p9)
}
  0x29   : > { %632 = dma.hbm_to_vmem [thread:$0]  (!%p996_p13), %s1122_s0, 64, %s171_s9, [#allocation5]  }
  0x2a   : > { %s208_s24 = sand.u32 1, %s890_s21   ;;  %s773_s25 = scalar_lea.vmem %s192_s15, 512 }
  0x2b   : > { %p774_p5 = scmp.ne.s32.totalorder %s192_s15, %s773_s25  ;;  %p781_p4 = scmp.lt.s32.totalorder %s192_s15, %s192_s15 }
  0x2c   : > { %p782_p8 = scmp.lt.s32.totalorder %s773_s25, %s773_s25 }
  0x2d   : > { %p776_p6 = pnand %p774_p5, %p712_p1 }
  0x2e   : > { %p783_p12 = por %p782_p8, %p781_p4 }
  0x2f   : > { %p777_p11 = pneg %p776_p6 }
  0x31   : > { %p784_p2 = pnand %p783_p12, %p777_p11 }
  0x33   : > { %787 = shalt.err (!%p784_p2)
}
  0x34   : > { %s895_s27 = smov 128   ;;  %s896_s30 = smov 8  }
  0x35   : > { %638 = dma.hbm_to_vmem [thread:$0]  (!%p996_p13), %s1125_s3, 512, %s192_s15, [#allocation11], %s895_s27, %s895_s27, %s896_s30  }
  0x36   : > { %s210_s9 = sand.u32 1, %s886_s20   ;;  %s566_s12 = sshll.u32 %s890_s21, 6 }
  0x37   : > { %s565_s11 = sshll.u32 %s210_s9, 4  ;;  %s1040_s16 = scalar_lea.hbm %s1123_s1, %s566_s12 }
  0x38   : > { %s212_s17 = scalar_lea.vmem [#allocation7], %s565_s11  ;;  %s1044_s7 = scalar_lea.sflag [#allocation8], %s208_s24 }
  0x39   : > { %s218_s18 = sshll.u32 %s212_s17, 4  ;;  %s788_s25 = scalar_lea.hbm %s1040_s16, 256  ;;  %s1042_s18 = int_to_ptr.vmem [resolvable:$true] %s218_s18 }
  0x3a   : > { %p789_p1 = scmp.ne.s32.totalorder %s1040_s16, %s788_s25  ;;  %p790_p13 = pneg %p1002_p0 }
  0x3b   : > { %s793_s30 = scalar_lea.hbm %s1123_s1, 512  ;;  %p794_p9 = scmp.lt.s32.totalorder %s1040_s16, %s1123_s1 }
  0x3c   : > { %p791_p3 = pnand %p790_p13, %p789_p1  ;;  %p795_p5 = scmp.lt.s32.totalorder %s793_s30, %s788_s25 }
  0x3e   : > { %p792_p7 = pneg %p791_p3  ;;  %p796_p6 = por %p795_p5, %p794_p9 }
  0x40   : > { %p797_p11 = pnand %p796_p6, %p792_p7 }
  0x42   : > { %800 = shalt.err (!%p797_p11)
}
  0x43   : > { %s801_s24 = scalar_lea.vmem %s1042_s18, 256  ;;  %s897_s9 = smov [#allocation7]  }
  0x44   : > { %p802_p4 = scmp.ne.s32.totalorder %s1042_s18, %s801_s24  ;;  %s806_s11 = sshll.u32 %s897_s9, 4  ;;  %s807_s11 = int_to_ptr.vmem [resolvable:$false] %s806_s11 }
  0x45   : > { %s808_s12 = scalar_lea.vmem %s807_s11, 512  ;;  %p809_p2 = scmp.lt.s32.totalorder %s1042_s18, %s807_s11 }
  0x46   : > { %p804_p8 = pnand %p802_p4, %p790_p13  ;;  %p810_p1 = scmp.lt.s32.totalorder %s808_s12, %s801_s24 }
  0x48   : > { %p805_p12 = pneg %p804_p8  ;;  %p811_p3 = por %p810_p1, %p809_p2 }
  0x4a   : > { %p812_p10 = pnand %p811_p3, %p805_p12 }
  0x4c   : > { %815 = shalt.err (!%p812_p10)
}
  0x4d   : > { %s898_s13 = smov 64   ;;  %s899_s14 = smov 4  }
  0x4e   : > { %642 = dma.hbm_to_vmem [thread:$0]  (!%p1002_p0), %s1040_s16, 256, %s1042_s18, %s1044_s7, %s895_s27, %s898_s13, %s899_s14  }
  0x4f   : > { %p1136_p13 = scmp.ne.s32.totalorder %s1133_s29, 0 }
  0x50   : > { %p1137_p7 = scmp.eq.s32.totalorder (!%p1136_p13), %s958_s22, 0 }
  0x51   : > { %230 = sbr.rel (%p1136_p13) target bundleno = 953 (0x3b9), region = 40 }
  0x56   : > { %857 = dma.done.wait (%p1137_p7), [#allocation5], 64   ;;  %p1138_p9 = pmov %p1137_p7 }
  0x57   : > { %s236_s17 = sand.u32 1, %s958_s22   ;;  %s238_s25 = sand.u32 1, %s882_s19  }
  0x58   : > { %859 = vsyncadd (%p1138_p9), [#allocation5], 4294967232  ;;  %s569_s21 = sshll.u32 %s238_s25, 4  ;;  %s237_s15 = scalar_lea.sflag [#allocation8], %s236_s17 }
  0x59   : > { %s240_s30 = scalar_lea.vmem [#allocation7], %s569_s21  ;;  %p1139_p10 = scmp.ne.s32.totalorder %s1132_s28, 0 }
  0x5b   : > { %861 = dma.done.wait (%p1139_p10), %s237_s15, 256  }
  0x5c   : > { %863 = vsyncadd (%p1139_p10), %s237_s15, 4294967040  ;;  %p1140_p0 = pmov %p1137_p7 }
  0x5e   : > { %865 = dma.done.wait (%p1140_p0), [#allocation8], 128   ;;  %p1141_p5 = pmov %p1140_p0 }
  0x5f   : > { %p1142_p6 = pmov %p1140_p0 }
  0x60   : > { %867 = vsyncadd (%p1141_p5), [#allocation8], 4294967168 }
  0x61   : > { %869 = dma.done.wait (%p1142_p6), [#allocation11], 512   ;;  %p1143_p11 = pmov %p1140_p0 }
  0x62   : > { %p1144_p4 = scmp.ne.s32.totalorder %s958_s22, 0 }
  0x63   : > { %871 = vsyncadd (%p1143_p11), [#allocation11], 4294966784 }
  0x64   : > { %274 = sbr.rel (%p1144_p4) target bundleno = 107 (0x6b), region = 60 }
  0x69   : > { %vm275_vm0 = vcmask 7168   ;;  %v900_v0 = vmov -inf   ;;  %v901_v1 = vmov 0.0  }
  0x6a   : > { %276 = vst.msk [vmem:[#allocation2] sm:$0xff] %vm275_vm0, %v900_v0  ;;  %277 = vst.msk [vmem:[#allocation3] sm:$0xff] %vm275_vm0, %v901_v1 }
  0x6b PF: > { %v701_v2 = vld [vmem:[%s240_s30 + $0x8] sm:$0xff]   ;;  %v902_v3 = vmov 0.0   ;;  %v702_v4 = vld [vmem:[%s240_s30] sm:$0xff]   ;;  %vm903_vm1 = vmmov 0   ;;  %vm295_vm2 = vcmask 261120   ;;  %v340_v6 = vlaneseq  ;;  %s576_s28 = sshll.u32 %s958_s22, 7 }
  0x6c   : > { %592 = vmatprep.subr.bf16.mxu0 %v902_v3  ;;  %596 = vmatprep.mubr.msk.bf16.mxu0 %vm903_vm1, %v902_v3  ;;  %v278_v5 = vld [vmem:[#allocation4] sm:$0xf]  ;;  %v342_v8 = vstv %s576_s28  ;;  %v904_v15 = vmov 0   ;;  %vm366_vm4 = vcmask 7168   ;;  %p577_p8 = scmp.ne.s32.totalorder %s958_s22, 1 }
  0x6d   : > { %593 = vmatpush3.bf16.msra.mxu0 %v701_v2  ;;  %v341_v7 = vand.u32 127, %v340_v6  ;;  %700 = vset.pattern.permute.xlu0 %v904_v15 }
  0x6e   : > { %594 = vmatprep.subr.bf16.mxu0 %v902_v3 }
  0x6f   : > { %v343_v9 = vadd.s32 %v342_v8, %v341_v7 }
  0x71   : > { %595 = vmatpush3.bf16.msra.mxu0 %v702_v4  ;;  %vm344_vm3 = vcmp.lt.s32.totalorder %v343_v9, 250  ;;  %v346_v16 = vld [vmem:[#allocation2] sm:$0xff]  ;;  %v350_v26 = vld [vmem:[#allocation3] sm:$0xff] }
  0x74   : > { %597 = vmatmul.mubr.msk.bf16.vlgmr.msra.gmra.mxu0 %vm295_vm2, %v278_v5 }
 0x134   : > { %v333_v10 = vpop.f32.mrf.mxu0 }
 0x135   : > { %v345_v11 = vsel %vm344_vm3, %v333_v10, -inf }
 0x136   : > { %347 = vmax.xlane.f32.xlu0 %v345_v11  ;;  %v598_v12 = vpop.f32.mrf.mxu0 }
 0x138   : > { %v336_v13 = vpop.f32.mrf.mxu0 }
 0x13a   : > { %v599_v14 = vpop.f32.mrf.mxu0 }
 0x1bf   : > { %v348_v17 = vpop.xlane.xlu0 %347 }
 0x1c0   : > { %v349_v18 = vmax.f32 %v346_v16, %v348_v17 }
 0x1c2   : > { %v351_v19 = vsub.f32 %v346_v16, %v349_v18  ;;  %368 = vst.msk [vmem:[#allocation2] sm:$0xff] %vm366_vm4, %v349_v18  ;;  %357 = vperm.xlu0 %700, %v349_v18  }
 0x1c4   : > { %v352_v24 = vmul.f32 1.442695, %v351_v19 }
 0x23d   : > { %v358_v20 = vpop.permute.xlu0 %357 }
 0x23e   : > { %v360_v21 = vsub.f32 %v345_v11, %v358_v20 }
 0x240   : > { %v361_v22 = vmul.f32 1.442695, %v360_v21 }
 0x242   : > { %703 = vpow2.f32 %v361_v22 }
 0x243   : > { %705 = vpow2.f32 %v352_v24 }
 0x24f   : > { %v704_v23 = vpop.eup %703 }
 0x250   : > { %363 = vadd.xlane.f32.xlu1 %v704_v23  ;;  %v706_v25 = vpop.eup %705 }
 0x251   : > { %v354_v27 = vmul.f32 %v706_v25, %v350_v26 }
 0x2d8   : > { %372 = sbr.rel (%p577_p8) target bundleno = 938 (0x3aa), region = 64 }
 0x2d9   : > { %v364_v28 = vpop.xlane.xlu1 %363 }
 0x2da   : > { %v365_v29 = vadd.f32 %v364_v28, %v354_v27 }
 0x2dc   : > { %367 = vst.msk [vmem:[#allocation3] sm:$0xff] %vm366_vm4, %v365_v29 }
 0x2dd   : > { %v382_v30 = vld [vmem:[#allocation10 + $0x18] sm:$0xff]  ;;  %v905_v31 = vmov 0.0   ;;  %v381_v32 = vld [vmem:[#allocation10 + $0x10] sm:$0xff]  ;;  %vm906_vm5 = vmmov 0   ;;  %v907_v33 = vmov 0   ;;  %v380_v35 = vld [vmem:[#allocation10 + $0x8] sm:$0xff] }
 0x2de   : > { %600 = vmatprep.subr.mxu0 %v905_v31  ;;  %608 = vmatprep.mubr.msk.f32.mxu0 %vm906_vm5, %v905_v31  ;;  %v379_v36 = vld [vmem:[#allocation10] sm:$0xff]  ;;  %v378_v37 = vld [vmem:[#allocation9] sm:$0xff] }
 0x2df   : > { %601 = vmatpush3.msra.mxu0 %v382_v30  ;;  %707 = vset.pattern.permute.xlu0 %v907_v33  ;;  %v373_v39 = vld [vmem:[#allocation2] sm:$0xff] }
 0x2e0   : > { %602 = vmatprep.subr.mxu0 %v905_v31  ;;  %v579_v42 = vld [vmem:[%s1126_s4] ss:$0 sm:$0xff] }
 0x2e1   : > { %603 = vmatpush3.msra.mxu0 %v381_v32 }
 0x2e2   : > { %604 = vmatprep.subr.mxu0 %v905_v31 }
 0x2e3   : > { %v374_v34 = vld [vmem:[#allocation3] sm:$0xff]  ;;  %605 = vmatpush3.msra.mxu0 %v380_v35 }
 0x2e4   : > { %708 = vlog2.f32 %v374_v34  ;;  %606 = vmatprep.subr.mxu0 %v905_v31 }
 0x2e5   : > { %607 = vmatpush3.msra.mxu0 %v379_v36 }
 0x2e6   : > { %609 = vmatmul.mubr.msk.f32.vlgmr.msra.gmra.mxu0 %vm295_vm2, %v378_v37 }
 0x2f1   : > { %v709_v38 = vpop.eup %708 }
 0x2f2   : > { %v376_v40 = vmul.f32 0.6931472, %v709_v38 }
 0x2f4   : > { %v377_v41 = vadd.f32 %v376_v40, %v373_v39 }
 0x2f6   : > { %465 = vperm.xlu0 %707, %v377_v41  }
 0x371   : > { %v466_v43 = vpop.permute.xlu0 %465 }
 0x372   : > { %v468_v44 = vmul.f32 %v579_v42, %v466_v43 }
 0x3a6   : > { %v452_v45 = vpop.f32.mrf.mxu0 }
 0x3a7   : > { %v469_v46 = vsub.f32 %v452_v45, %v468_v44 }
 0x3a8   : > { %v610_v47 = vpop.f32.mrf.mxu0 }
 0x3a9   : > { %470 = vst [vmem:[#allocation12] sm:$0xff] %v469_v46 }
 0x3aa PF: > { %p650_p12 = scmp.eq.s32.totalorder %s958_s22, 1  ;;  %s908_s27 = smov [#allocation12]  }
 0x3ab   : > { %s478_s16 = sshll.u32 %s908_s27, 4  ;;  %s479_s16 = int_to_ptr.vmem [resolvable:$true] %s478_s16 }
 0x3ac   : > { %s816_s18 = scalar_lea.vmem %s479_s16, 128  ;;  %p823_p13 = scmp.lt.s32.totalorder %s479_s16, %s479_s16 }
 0x3ad   : > { %p817_p2 = scmp.ne.s32.totalorder %s479_s16, %s816_s18  ;;  %p824_p7 = scmp.lt.s32.totalorder %s816_s18, %s816_s18 }
 0x3af   : > { %p818_p1 = pnand %p817_p2, %p650_p12  ;;  %p825_p9 = por %p824_p7, %p823_p13 }
 0x3b1   : > { %p819_p3 = pneg %p818_p1 }
 0x3b3   : > { %p826_p10 = pnand %p825_p9, %p819_p3 }
 0x3b5   : > { %829 = shalt.err (!%p826_p10)
}
 0x3b6   : > { %626 = dma.vmem_to_hbm [thread:$0]  (%p650_p12), %s479_s16, 128, %s1127_s5, [#allocation6]  }
 0x3b7   : > { %873 = dma.done.wait (%p650_p12), [#allocation6], 128  }
 0x3b8   : > { %875 = vsyncadd (%p650_p12), [#allocation6], 4294967168 }
 0x3b9 PF: > { %p18_p0 = scmp.ge.s32.totalorder %s961_s23, 4   ;;  %s1145_s18 = smov %s882_s19 }
 0x3ba   : > { %s1146_s19 = smov %s886_s20  ;;  %s1147_s20 = smov %s971_s26 }
 0x3bb   : > { %s1148_s21 = smov %s961_s23  ;;  %20 = sbr.rel (!%p18_p0) target bundleno = 6 (0x6), region = 98 }
 0x3c0   :  { %491 = vsyncpa [#allocation5], 1 }
 0x3c1   :  { %493 = vsyncpa [#allocation5 + $0x1], 1 }
 0x3c2   :  { %494 = vsyncpa [#allocation8], 1 }
 0x3c3   :  { %496 = vsyncpa [#allocation8 + $0x1], 1 }
 0x3c4   :  { %497 = vsyncpa [#allocation11], 1 }
 0x3c5   :  { %498 = vsyncpa [#allocation6], 1 }
 0x3c6   :  { %500 = vsyncpa [#allocation6 + $0x1], 1 }

</bundles_post_ra>
